<compile_context>
chip_gen: v6e
topology: v6e:2x2x1
jax: 0.10.0
libtpu: 0.0.40
codegen_flags: <defaults>
</compile_context>

<pallas_src>
import functools
import math

import jax
import jax.numpy as jnp
from jax.experimental import pallas as pl
from jax.experimental.pallas import tpu as pltpu

NEG_BIG = -1e30      # padded-class-logit bias (exp underflows to exactly 0)


# ----------------------------------------------------------------------------
# Fused kernel: (amplifier + decoder layer-1) -> ReLU -> layer-2 -> log_softmax
#               -> per-tile NLL partial sum.
# ----------------------------------------------------------------------------
def fused_forward_loss_kernel(x_ref, tgt_ref, wf_ref, bf_ref, w2_ref, b2_ref,
                              logp_ref, ploss_ref, *, total_rows, num_classes,
                              needs_row_mask):
    tm = logp_ref.shape[0]

    x = x_ref[...]                                            # (TM, 1) f32

    # amplifier folded into decoder layer-1 (VPU broadcast FMA, lane-dense
    # over the 128-padded hidden axis; padded lanes are exactly 0)
    h = jnp.maximum(x * wf_ref[...] + bf_ref[...], 0.0)       # (TM, H_PAD)

    # decoder layer-2 on the 128-lane-padded class axis (full-K MXU pass)
    logits = jnp.dot(h, w2_ref[...], preferred_element_type=jnp.float32)
    logits = logits + b2_ref[...]                             # (TM, C_PAD)

    # numerically stable log_softmax; padded class lanes contribute exp(.)==0
    m = jnp.max(logits, axis=-1, keepdims=True)
    s = logits - m
    lse = jnp.log(jnp.sum(jnp.exp(s), axis=-1, keepdims=True))
    logp = s - lse                                            # (TM, C_PAD)

    # store only the real classes -> minimal HBM writeback
    logp_ref[...] = logp[:, :num_classes]

    # fused NLLLoss partial: sum over valid rows of logp[r, tgt[r]]
    col = jax.lax.broadcasted_iota(jnp.int32, logp.shape, 1)
    hit = col == tgt_ref[...]                                 # tgt < C <= 128
    if needs_row_mask:                                        # static flag
        i = pl.program_id(0)
        row = jax.lax.broadcasted_iota(jnp.int32, logp.shape, 0)
        hit = hit & ((i * tm + row) < total_rows)
    sel = jnp.where(hit, logp, 0.0)
    ploss_ref[...] = jnp.sum(sel, axis=0, keepdims=True)      # (1, C_PAD)


def _round_up(v, m):
    return -(-v // m) * m


def _choose_tm(M, tm_max):
    """Pick a row tile: multiple of 8, <= tm_max, and (when possible) giving
    at least 2 grid steps so v7x's two TensorCores both get rows."""
    if M <= 8:
        return M                       # block == full array dim, always legal
    tm = min(tm_max, M)
    if tm >= M:                        # would be a single grid step
        tm = _round_up((M + 1) // 2, 8)
    else:
        tm = (tm // 8) * 8
    return max(tm, 8)


# ----------------------------------------------------------------------------
# Wrapper: flattens (B,S) -> M rows, fuses/pads weights, launches the kernel.
# Returns (log_probs (M, C), scalar mean NLL loss).
# ----------------------------------------------------------------------------
def base_seq_model_forward_and_loss(x_flat, targets, params, *, tm_max=2048):
    wamp, bamp, w1, b1, w2, b2 = params
    M = x_flat.shape[0]
    H = w1.shape[1]
    C = w2.shape[1]

    H_PAD = _round_up(max(H, 128), 128)
    C_PAD = _round_up(max(C, 128), 128)

    # algebraic fusion of amplifier into decoder layer-1 (done once, outside)
    w_fused = (wamp @ w1).astype(jnp.float32)                 # (1, H)
    b_fused = (bamp @ w1 + b1).astype(jnp.float32)            # (1, H)

    # zero-pad hidden axis (exact) and pad class axis with -1e30 bias columns
    wfp = jnp.zeros((1, H_PAD), jnp.float32).at[:, :H].set(w_fused)
    bfp = jnp.zeros((1, H_PAD), jnp.float32).at[:, :H].set(b_fused)
    w2p = jnp.zeros((H_PAD, C_PAD), jnp.float32).at[:H, :C].set(w2)
    b2p = jnp.full((1, C_PAD), NEG_BIG, jnp.float32).at[:, :C].set(b2)

    TM = _choose_tm(M, tm_max)
    G = -(-M // TM)                     # ceil-div grid size
    needs_row_mask = (M % TM) != 0

    x2d = x_flat.reshape(M, 1).astype(jnp.float32)
    tgt2d = targets.reshape(M, 1).astype(jnp.int32)

    kernel = functools.partial(fused_forward_loss_kernel,
                               total_rows=M, num_classes=C,
                               needs_row_mask=needs_row_mask)

    logp, ploss = pl.pallas_call(
        kernel,
        grid=(G,),
        in_specs=[
            pl.BlockSpec((TM, 1), lambda i: (i, 0)),          # x rows (tiled)
            pl.BlockSpec((TM, 1), lambda i: (i, 0)),          # targets (tiled)
            pl.BlockSpec((1, H_PAD), lambda i: (0, 0)),       # fused weight
            pl.BlockSpec((1, H_PAD), lambda i: (0, 0)),       # fused bias
            pl.BlockSpec((H_PAD, C_PAD), lambda i: (0, 0)),   # w2 (padded)
            pl.BlockSpec((1, C_PAD), lambda i: (0, 0)),       # b2 (padded)
        ],
        out_specs=[
            pl.BlockSpec((TM, C), lambda i: (i, 0)),          # log-probs (no pad)
            pl.BlockSpec((None, 1, C_PAD), lambda i: (i, 0, 0)),  # loss partials
        ],
        out_shape=[
            jax.ShapeDtypeStruct((M, C), jnp.float32),
            jax.ShapeDtypeStruct((G, 1, C_PAD), jnp.float32),
        ],
        compiler_params=pltpu.CompilerParams(
            dimension_semantics=("parallel",),   # shard rows over v7x's 2 TCs
        ),
    )(x2d, tgt2d, wfp, bfp, w2p, b2p)

    loss = -jnp.sum(ploss) / M                   # mean NLL
    return logp, loss


# ----------------------------------------------------------------------------
# Deterministic parameter construction (PyTorch nn.Linear-style uniform init)
# ----------------------------------------------------------------------------
def init_params(key, embed_dim, hidden_dim, class_num):
    def linear(key, fan_in, fan_out):
        kw, kb = jax.random.split(key)
        bound = 1.0 / math.sqrt(fan_in)
        w = jax.random.uniform(kw, (fan_in, fan_out), jnp.float32, -bound, bound)
        b = jax.random.uniform(kb, (1, fan_out), jnp.float32, -bound, bound)
        return w, b

    k0, k1, k2 = jax.random.split(key, 3)
    wamp, bamp = linear(k0, 1, embed_dim)          # amplifier: Linear(1, E)
    w1, b1 = linear(k1, embed_dim, hidden_dim)     # decoder:   Linear(E, H)
    w2, b2 = linear(k2, hidden_dim, class_num)     # decoder:   Linear(H, C)
    return (wamp, bamp, w1, b1, w2, b2)


def reference_forward(x_flat, params):
    wamp, bamp, w1, b1, w2, b2 = params
    emb = x_flat[:, None] * wamp + bamp            # Linear(1, E)
    h = jnp.maximum(emb @ w1 + b1, 0.0)            # Linear(E,H) -> ReLU
    logits = h @ w2 + b2                           # Linear(H, C)
    return jax.nn.log_softmax(logits, axis=-1)


if __name__ == "__main__":
    # Small shapes consistent with the module: batch=2, seq=8, embed=32,
    # hidden=32, classes=8.
    B, S = 2, 8
    E, H, C = 32, 32, 8
    M = B * S

    key = jax.random.PRNGKey(0)
    kx, kt, kp = jax.random.split(key, 3)

    x = jax.random.normal(kx, (B, S), jnp.float32)            # scalar sequence
    targets = jax.random.randint(kt, (M,), 0, C, jnp.int32)   # class labels
    params = init_params(kp, E, H, C)

    x_flat = x.reshape(M)

    # Fused Pallas forward + loss
    logp, loss = base_seq_model_forward_and_loss(x_flat, targets, params)
    jax.block_until_ready((logp, loss))

    # Numerical check vs. pure-JAX reference
    logp_ref = reference_forward(x_flat, params)
    loss_ref = -jnp.mean(logp_ref[jnp.arange(M), targets])
    assert jnp.allclose(logp, logp_ref, atol=1e-4, rtol=1e-4)
    assert jnp.allclose(loss, loss_ref, atol=1e-4, rtol=1e-4)

    print("KERNEL_OK")
</pallas_src>

<mosaic_0001>
module attributes {stable_mosaic.version = 11 : i64} {
  func.func @fused_forward_loss_kernel(%arg0: i32, %arg1: memref<8x1xf32, #tpu.memory_space<vmem>>, %arg2: memref<8x1xi32, #tpu.memory_space<vmem>>, %arg3: memref<1x128xf32, #tpu.memory_space<vmem>>, %arg4: memref<1x128xf32, #tpu.memory_space<vmem>>, %arg5: memref<128x128xf32, #tpu.memory_space<vmem>>, %arg6: memref<1x128xf32, #tpu.memory_space<vmem>>, %arg7: memref<8x8xf32, #tpu.memory_space<vmem>>, %arg8: memref<1x1x128xf32, #tpu.memory_space<vmem>>) attributes {dimension_semantics = [#tpu.dimension_semantics<parallel>], iteration_bounds = array<i64: 2>, scalar_prefetch = 0 : i64, scratch_operands = 0 : i64, tpu.core_type = #tpu.core_type<tc>, window_params = [{transform_indices = @transform_0, window_bounds = array<i64: 8, 1>}, {transform_indices = @transform_1, window_bounds = array<i64: 8, 1>}, {pipeline_mode = #tpu.pipeline_mode<synchronous>, transform_indices = @transform_2, window_bounds = array<i64: 1, 128>}, {pipeline_mode = #tpu.pipeline_mode<synchronous>, transform_indices = @transform_3, window_bounds = array<i64: 1, 128>}, {pipeline_mode = #tpu.pipeline_mode<synchronous>, transform_indices = @transform_4, window_bounds = array<i64: 128, 128>}, {pipeline_mode = #tpu.pipeline_mode<synchronous>, transform_indices = @transform_5, window_bounds = array<i64: 1, 128>}, {transform_indices = @transform_6, window_bounds = array<i64: 8, 8>}, {transform_indices = @transform_7, window_bounds = array<i64: 1, 1, 128>}]} {
    %c0 = arith.constant 0 : index
    %c0_0 = arith.constant 0 : index
    %0 = vector.load %arg1[%c0, %c0_0] : memref<8x1xf32, #tpu.memory_space<vmem>>, vector<8x1xf32>
    %c0_1 = arith.constant 0 : index
    %c0_2 = arith.constant 0 : index
    %1 = vector.load %arg3[%c0_1, %c0_2] : memref<1x128xf32, #tpu.memory_space<vmem>>, vector<1x128xf32>
    %2 = vector.broadcast %0 : vector<8x1xf32> to vector<8x128xf32>
    %3 = vector.broadcast %1 : vector<1x128xf32> to vector<8x128xf32>
    %4 = arith.mulf %2, %3 : vector<8x128xf32>
    %c0_3 = arith.constant 0 : index
    %c0_4 = arith.constant 0 : index
    %5 = vector.load %arg4[%c0_3, %c0_4] : memref<1x128xf32, #tpu.memory_space<vmem>>, vector<1x128xf32>
    %6 = vector.broadcast %5 : vector<1x128xf32> to vector<8x128xf32>
    %7 = arith.addf %4, %6 : vector<8x128xf32>
    %cst = arith.constant 0.000000e+00 : f32
    %8 = vector.broadcast %cst : f32 to vector<8x128xf32>
    %9 = arith.maximumf %7, %8 : vector<8x128xf32>
    %c0_5 = arith.constant 0 : index
    %c0_6 = arith.constant 0 : index
    %10 = vector.load %arg5[%c0_5, %c0_6] : memref<128x128xf32, #tpu.memory_space<vmem>>, vector<128x128xf32>
    %cst_7 = arith.constant dense<0.000000e+00> : vector<8x128xf32>
    %11 = tpu.matmul %9, %10, %cst_7 {dimension_numbers = #tpu.dot_dimension_numbers<[1], [0], [0], [1], [0, 0, 1, 1], [], []>} : vector<8x128xf32>, vector<128x128xf32>, vector<8x128xf32> -> vector<8x128xf32>
    %c0_8 = arith.constant 0 : index
    %c0_9 = arith.constant 0 : index
    %12 = vector.load %arg6[%c0_8, %c0_9] : memref<1x128xf32, #tpu.memory_space<vmem>>, vector<1x128xf32>
    %13 = vector.broadcast %12 : vector<1x128xf32> to vector<8x128xf32>
    %14 = arith.addf %11, %13 : vector<8x128xf32>
    %cst_10 = arith.constant dense<0xFF800000> : vector<8xf32>
    %15 = vector.multi_reduction <maximumf>, %14, %cst_10 [1] : vector<8x128xf32> to vector<8xf32>
    %16 = vector.shape_cast %15 : vector<8xf32> to vector<8x1xf32>
    %17 = vector.broadcast %16 : vector<8x1xf32> to vector<8x128xf32>
    %18 = arith.subf %14, %17 : vector<8x128xf32>
    %19 = math.exp %18 : vector<8x128xf32>
    %cst_11 = arith.constant dense<0.000000e+00> : vector<8xf32>
    %20 = vector.multi_reduction <add>, %19, %cst_11 [1] : vector<8x128xf32> to vector<8xf32>
    %21 = vector.shape_cast %20 : vector<8xf32> to vector<8x1xf32>
    %22 = math.log %21 : vector<8x1xf32>
    %23 = vector.broadcast %22 : vector<8x1xf32> to vector<8x128xf32>
    %24 = arith.subf %18, %23 : vector<8x128xf32>
    %25 = vector.extract_strided_slice %24 {offsets = [0, 0], sizes = [8, 8], strides = [1, 1]} : vector<8x128xf32> to vector<8x8xf32>
    %c0_12 = arith.constant 0 : index
    %c0_13 = arith.constant 0 : index
    %26 = vector.load %arg7[%c0_12, %c0_13] : memref<8x8xf32, #tpu.memory_space<vmem>>, vector<8x8xf32>
    tpu.vector_store %arg7[%c0_12, %c0_13], %25 {strides = array<i32>} : memref<8x8xf32, #tpu.memory_space<vmem>>, vector<8x8xf32>,
    %27 = tpu.iota {dimensions = array<i32: 1>} : vector<8x128xi32>
    %c0_14 = arith.constant 0 : index
    %c0_15 = arith.constant 0 : index
    %28 = vector.load %arg2[%c0_14, %c0_15] : memref<8x1xi32, #tpu.memory_space<vmem>>, vector<8x1xi32>
    %29 = vector.broadcast %28 : vector<8x1xi32> to vector<8x128xi32>
    %30 = arith.cmpi eq, %27, %29 : vector<8x128xi32>
    %cst_16 = arith.constant 0.000000e+00 : f32
    %31 = vector.broadcast %cst_16 : f32 to vector<8x128xf32>
    %32 = arith.select %30, %24, %31 : vector<8x128xi1>, vector<8x128xf32>
    %cst_17 = arith.constant dense<0.000000e+00> : vector<128xf32>
    %33 = vector.multi_reduction <add>, %32, %cst_17 [0] : vector<8x128xf32> to vector<128xf32>
    %34 = vector.shape_cast %33 : vector<128xf32> to vector<1x128xf32>
    %c0_18 = arith.constant 0 : index
    %c0_19 = arith.constant 0 : index
    %c0_20 = arith.constant 0 : index
    %35 = vector.load %arg8[%c0_18, %c0_19, %c0_20] : memref<1x1x128xf32, #tpu.memory_space<vmem>>, vector<1x1x128xf32>
    %36 = vector.shape_cast %35 : vector<1x1x128xf32> to vector<1x128xf32>
    %37 = vector.shape_cast %34 : vector<1x128xf32> to vector<1x1x128xf32>
    tpu.vector_store %arg8[%c0_18, %c0_19, %c0_20], %37 {strides = array<i32>} : memref<1x1x128xf32, #tpu.memory_space<vmem>>, vector<1x1x128xf32>,
    return
  }
  func.func @transform_0(%arg0: i32) -> (i32, i32) {
    %c0_i32 = arith.constant 0 : i32
    %c0_i32_0 = arith.constant 0 : i32
    return %arg0, %c0_i32 : i32, i32
  }
  func.func @transform_1(%arg0: i32) -> (i32, i32) {
    %c0_i32 = arith.constant 0 : i32
    %c0_i32_0 = arith.constant 0 : i32
    return %arg0, %c0_i32 : i32, i32
  }
  func.func @transform_2(%arg0: i32) -> (i32, i32) {
    %c0_i32 = arith.constant 0 : i32
    %c0_i32_0 = arith.constant 0 : i32
    %c0_i32_1 = arith.constant 0 : i32
    return %c0_i32, %c0_i32_0 : i32, i32
  }
  func.func @transform_3(%arg0: i32) -> (i32, i32) {
    %c0_i32 = arith.constant 0 : i32
    %c0_i32_0 = arith.constant 0 : i32
    %c0_i32_1 = arith.constant 0 : i32
    return %c0_i32, %c0_i32_0 : i32, i32
  }
  func.func @transform_4(%arg0: i32) -> (i32, i32) {
    %c0_i32 = arith.constant 0 : i32
    %c0_i32_0 = arith.constant 0 : i32
    %c0_i32_1 = arith.constant 0 : i32
    return %c0_i32, %c0_i32_0 : i32, i32
  }
  func.func @transform_5(%arg0: i32) -> (i32, i32) {
    %c0_i32 = arith.constant 0 : i32
    %c0_i32_0 = arith.constant 0 : i32
    %c0_i32_1 = arith.constant 0 : i32
    return %c0_i32, %c0_i32_0 : i32, i32
  }
  func.func @transform_6(%arg0: i32) -> (i32, i32) {
    %c0_i32 = arith.constant 0 : i32
    %c0_i32_0 = arith.constant 0 : i32
    return %arg0, %c0_i32 : i32, i32
  }
  func.func @transform_7(%arg0: i32) -> (i32, i32, i32) {
    %c0_i32 = arith.constant 0 : i32
    %c0_i32_0 = arith.constant 0 : i32
    %c0_i32_1 = arith.constant 0 : i32
    return %arg0, %c0_i32, %c0_i32_0 : i32, i32, i32
  }
}

</mosaic_0001>

<bundles_post_ra>
// kernel: tpu_custom_call.1
= control target key start
LH: loop header
LB: loop body
LE: loop exit
PB: predicated region body
PF: predicated region fallthrough
CT: control target
= control target key end

     0   :  { %13 = vsyncpa [#allocation3], 0  ;;  %s974_s0 = inlined_call_operand.vmem [shape: f32[16,1], index: 0, kind: input, shape index: {}]   ;;  %s975_s1 = inlined_call_operand.vmem [shape: s32[16,1], index: 1, kind: input, shape index: {}]   ;;  %s976_s2 = inlined_call_operand.vmem [shape: f32[1,128], index: 2, kind: input, shape index: {}]   ;;  %s977_s3 = inlined_call_operand.vmem [shape: f32[1,128], index: 3, kind: input, shape index: {}]   ;;  %s978_s4 = inlined_call_operand.hbm [shape: f32[128,128], index: 4, kind: input, shape index: {}]   ;;  %s979_s5 = inlined_call_operand.vmem [shape: f32[1,128], index: 5, kind: input, shape index: {}]   ;;  %s980_s6 = inlined_call_operand.vmem [shape: f32[16,8], index: 6, kind: output, shape index: {0}]   ;;  %s981_s7 = inlined_call_operand.hbm [shape: f32[2,1,128], index: 7, kind: output, shape index: {1}]  }
   0x1   :  { %14 = vsyncpa [#allocation4], 0 }
   0x2   :  { %16 = vsyncpa [#allocation4 + $0x1], 0  ;;  %s849_s24 = smov 0   ;;  %s851_s25 = smov 0  }
   0x3   :  { %s853_s26 = smov 0   ;;  %s855_s27 = smov 0  }
   0x4 LB: > { %s870_s28 = sadd.s32 4294967295, %s800_s27   ;;  %s582_s29 = sadd.s32 4294967294, %s800_s27   ;;  %s800_s27 = sphi %s855_s27, %s989_s27   ;;  %s796_s26 = sphi %s853_s26, %s988_s26   ;;  %s792_s25 = sphi %s851_s25, %s987_s25   ;;  %s788_s24 = sphi %s849_s24, %s986_s24  }
   0x5   : > { %s874_s30 = sadd.s32 1, %s800_s27   ;;  %s191_s8 = sadd.s32 1, %s796_s26 }
   0x6   : > { %s188_s9 = ssub.s32 %s800_s27, %s874_s30  ;;  %p201_p0 = scmp.ne.s32.totalorder %s796_s26, %s792_s25 }
   0x7   : > { %p189_p1 = scmp.eq.s32.totalorder %s188_s9, 0  ;;  %p202_p2 = scmp.eq.s32.totalorder %s870_s28, 1 }
   0x8   : > { %p207_p3 = scmp.ne.s32.totalorder %s792_s25, %s788_s24  ;;  %p208_p4 = scmp.eq.s32.totalorder %s582_s29, 1 }
   0x9   : > { %s885_s10 = scalar_select %p189_p1, %s796_s26, %s191_s8  }
   0xa   : > { %p887_p5 = por %p202_p2, %p201_p0  ;;  %p891_p6 = por %p208_p4, %p207_p3 }
   0xb   : > { %p583_p7 = scmp.ge.s32.totalorder %s800_s27, 1  ;;  %p215_p8 = scmp.lt.s32.totalorder %s800_s27, 3 }
   0xc   : > { %s983_s12 = scalar_select %p891_p6, 1, 0 }
   0xd   : > { %p663_p9 = scmp.eq.s32.totalorder %s870_s28, 0  ;;  %p898_p10 = pnand %p583_p7, %p215_p8 }
   0xe   : > { %s802_s14 = smov [#allocation2]  }
   0xf   : > { %s233_s15 = sshll.u32 %s802_s14, 4  ;;  %p655_p11 = pneg %p898_p10  ;;  %s234_s15 = int_to_ptr.vmem [resolvable:$true] %s233_s15 }
  0x10   : > { %s721_s16 = scalar_lea.vmem %s234_s15, 2048  ;;  %p729_p3 = scmp.lt.s32.totalorder %s234_s15, %s234_s15 }
  0x11   : > { %p656_p12 = pnand %p663_p9, %p655_p11  ;;  %p722_p0 = scmp.ne.s32.totalorder %s234_s15, %s721_s16 }
  0x12   : > { %p730_p4 = scmp.lt.s32.totalorder %s721_s16, %s721_s16 }
  0x13   : > { %p712_p13 = pneg %p656_p12 }
  0x14   : > { %p731_p6 = por %p730_p4, %p729_p3 }
  0x15   : > { %p724_p1 = pnand %p722_p0, %p712_p13 }
  0x17   : > { %p725_p2 = pneg %p724_p1 }
  0x19   : > { %p732_p7 = pnand %p731_p6, %p725_p2 }
  0x1b   : > { %735 = shalt.err (!%p732_p7)
}
  0x1c   : > { %s803_s17 = smov 128   ;;  %s804_s18 = smov 8  }
  0x1d   : > { %658 = dma.hbm_to_vmem [thread:$0]  (!%p656_p12), %s978_s4, 2048, %s234_s15, [#allocation3], %s803_s17, %s803_s17, %s804_s18  }
  0x1e   : > { %266 = sbr.rel (%p898_p10) target bundleno = 706 (0x2c2), region = 44 }
  0x23   : > { %779 = dma.done.wait (%p663_p9), [#allocation3], 2048  }
  0x24   : > { %781 = vsyncadd (%p663_p9), [#allocation3], 4294965248  ;;  %p304_p8 = scmp.lt.s32.totalorder %s870_s28, 1  ;;  %v805_v0 = vmov 0   ;;  %v806_v1 = vmov 0.0   ;;  %v354_v3 = vld [vmem:[#allocation2 + $0x78] sm:$0xff]  ;;  %v444_v35 = vlaneseq }
  0x25   : > { %704 = vset.pattern.permute.xlu0 %v805_v0  ;;  %614 = vmatprep.subr.mxu0 %v806_v1  ;;  %v353_v4 = vld [vmem:[#allocation2 + $0x70] sm:$0xff]  ;;  %v352_v5 = vld [vmem:[#allocation2 + $0x68] sm:$0xff]  ;;  %vm807_vm0 = vmmov 0   ;;  %v351_v6 = vld [vmem:[#allocation2 + $0x60] sm:$0xff]  ;;  %vm442_vm1 = vcmask 64512   ;;  %s594_s9 = sshll.u32 %s870_s28, 4 }
  0x26   : > { %s305_s21 = scalar_select %p304_p8, %s870_s28, 1  ;;  %705 = vset.pattern.permute.xlu1 %v805_v0  ;;  %615 = vmatpush3.msra.mxu0 %v354_v3  ;;  %v350_v7 = vld [vmem:[#allocation2 + $0x58] sm:$0xff]  ;;  %v349_v8 = vld [vmem:[#allocation2 + $0x50] sm:$0xff]  ;;  %v348_v9 = vld [vmem:[#allocation2 + $0x48] sm:$0xff]  ;;  %v445_v36 = vand.u32 127, %v444_v35 }
  0x27   : > { %616 = vmatprep.subr.mxu0 %v806_v1  ;;  %646 = vmatprep.mubr.msk.f32.mxu0 %vm807_vm0, %v806_v1  ;;  %v347_v10 = vld [vmem:[#allocation2 + $0x40] sm:$0xff]  ;;  %v346_v11 = vld [vmem:[#allocation2 + $0x38] sm:$0xff]  ;;  %v345_v12 = vld [vmem:[#allocation2 + $0x30] sm:$0xff]  ;;  %s808_s19 = smov [#allocation5]  }
  0x28   : > { %s917_s22 = sshll.u32 %s305_s21, 3  ;;  %617 = vmatpush3.msra.mxu0 %v353_v4  ;;  %v344_v13 = vld [vmem:[#allocation2 + $0x28] sm:$0xff]  ;;  %v343_v14 = vld [vmem:[#allocation2 + $0x20] sm:$0xff]  ;;  %v342_v15 = vld [vmem:[#allocation2 + $0x18] sm:$0xff] }
  0x29   : > { %s307_s8 = scalar_lea.vmem %s974_s0, %s917_s22  ;;  %618 = vmatprep.subr.mxu0 %v806_v1  ;;  %v341_v16 = vld [vmem:[#allocation2 + $0x10] sm:$0xff]  ;;  %v340_v17 = vld [vmem:[#allocation2 + $0x8] sm:$0xff]  ;;  %v339_v18 = vld [vmem:[#allocation2] sm:$0xff]  ;;  %s311_s20 = scalar_lea.vmem %s975_s1, %s917_s22 }
  0x2a   : > { %v316_v2 = vld [vmem:[%s307_s8] sm:$0xff]  ;;  %619 = vmatpush3.msra.mxu0 %v352_v5  ;;  %s315_s29 = scalar_lea.vmem %s980_s6, %s917_s22  ;;  %s302_s8 = sand.u32 1, %s792_s25  }
  0x2b   : > { %320 = vperm.xlu0 %704, %v316_v2   ;;  %620 = vmatprep.subr.mxu0 %v806_v1  ;;  %v591_v19 = vld [vmem:[%s976_s2] ss:$0 sm:$0xff]  ;;  %s303_s13 = scalar_lea.vmem [#allocation5], %s302_s8  ;;  %s477_s22 = scalar_lea.hbm %s981_s7, %s594_s9 }
  0x2c   : > { %621 = vmatpush3.msra.mxu0 %v351_v6  ;;  %v592_v20 = vld [vmem:[%s977_s3] ss:$0 sm:$0xff]  ;;  %s479_s14 = sshll.u32 %s303_s13, 4  ;;  %s464_s17 = scalar_lea.sflag [#allocation4], %s302_s8  ;;  %s480_s14 = int_to_ptr.vmem [resolvable:$true] %s479_s14 }
  0x2d   : > { %622 = vmatprep.subr.mxu0 %v806_v1  ;;  %v593_v25 = vld [vmem:[%s979_s5] ss:$0 sm:$0xff]  ;;  %s736_s18 = scalar_lea.vmem %s480_s14, 16 }
  0x2e   : > { %623 = vmatpush3.msra.mxu0 %v350_v7  ;;  %v446_v33 = vld [vmem:[%s311_s20] sm:$0xff]  ;;  %p737_p6 = scmp.ne.s32.totalorder %s480_s14, %s736_s18  ;;  %s740_s20 = sshll.u32 %s808_s19, 4  ;;  %s741_s20 = int_to_ptr.vmem [resolvable:$false] %s740_s20 }
  0x2f   : > { %624 = vmatprep.subr.mxu0 %v806_v1  ;;  %s742_s28 = scalar_lea.vmem %s741_s20, 32  ;;  %p743_p11 = scmp.lt.s32.totalorder %s480_s14, %s741_s20 }
  0x30   : > { %625 = vmatpush3.msra.mxu0 %v349_v8  ;;  %p738_p9 = pnand %p737_p6, %p887_p5  ;;  %p744_p12 = scmp.lt.s32.totalorder %s742_s28, %s736_s18 }
  0x31   : > { %626 = vmatprep.subr.mxu0 %v806_v1 }
  0x32   : > { %627 = vmatpush3.msra.mxu0 %v348_v9  ;;  %p739_p10 = pneg %p738_p9  ;;  %p745_p13 = por %p744_p12, %p743_p11 }
  0x33   : > { %628 = vmatprep.subr.mxu0 %v806_v1 }
  0x34   : > { %629 = vmatpush3.msra.mxu0 %v347_v10  ;;  %p746_p0 = pnand %p745_p13, %p739_p10 }
  0x35   : > { %630 = vmatprep.subr.mxu0 %v806_v1 }
  0x36   : > { %631 = vmatpush3.msra.mxu0 %v346_v11 }
  0x37   : > { %632 = vmatprep.subr.mxu0 %v806_v1 }
  0x38   : > { %633 = vmatpush3.msra.mxu0 %v345_v12 }
  0x39   : > { %634 = vmatprep.subr.mxu0 %v806_v1 }
  0x3a   : > { %635 = vmatpush3.msra.mxu0 %v344_v13 }
  0x3b   : > { %636 = vmatprep.subr.mxu0 %v806_v1 }
  0x3c   : > { %637 = vmatpush3.msra.mxu0 %v343_v14 }
  0x3d   : > { %638 = vmatprep.subr.mxu0 %v806_v1 }
  0x3e   : > { %639 = vmatpush3.msra.mxu0 %v342_v15 }
  0x3f   : > { %640 = vmatprep.subr.mxu0 %v806_v1 }
  0x40   : > { %641 = vmatpush3.msra.mxu0 %v341_v16 }
  0x41   : > { %642 = vmatprep.subr.mxu0 %v806_v1 }
  0x42   : > { %643 = vmatpush3.msra.mxu0 %v340_v17 }
  0x43   : > { %644 = vmatprep.subr.mxu0 %v806_v1 }
  0x44   : > { %645 = vmatpush3.msra.mxu0 %v339_v18 }
  0xa6   : > { %v321_v21 = vpop.permute.xlu0 %320 }
  0xa7   : > { %v329_v22 = vmul.f32 %v591_v19, %v321_v21 }
  0xa9   : > { %v337_v23 = vadd.f32 %v592_v20, %v329_v22 }
  0xab   : > { %v338_v24 = vmax.f32 %v337_v23, 0.0 }
  0xad   : > { %647 = vmatmul.mubr.f32.vlgmr.msra.gmra.mxu0 %v338_v24 }
 0x16d   : > { %v428_v26 = vpop.f32.mrf.mxu0 }
 0x16e   : > { %v429_v27 = vadd.f32 %v593_v25, %v428_v26 }
 0x16f   : > { %v648_v28 = vpop.f32.mrf.mxu0 }
 0x170   : > { %432 = vmax.xlane.f32.xlu0 %v429_v27 }
 0x1f9   : > { %v433_v29 = vpop.xlane.xlu0 %432 }
 0x1fa   : > { %v434_v30 = vsub.f32 %v429_v27, %v433_v29 }
 0x1fc   : > { %v435_v31 = vmul.f32 1.442695, %v434_v30 }
 0x1fe   : > { %706 = vpow2.f32 %v435_v31 }
 0x20b   : > { %v707_v32 = vpop.eup %706 }
 0x20c   : > { %437 = vadd.xlane.f32.xlu1 %v707_v32 }
 0x21d   : > { %448 = vperm.xlu1 %705, %v446_v33  }
 0x295   : > { %v438_v34 = vpop.xlane.xlu1 %437 }
 0x296   : > { %708 = vlog2.f32 %v438_v34 }
 0x299   : > { %v449_v37 = vpop.permute.xlu1 %448 }
 0x29a   : > { %vm450_vm2 = vcmp.eq.s32.totalorder %v445_v36, %v449_v37 }
 0x2a3   : > { %v709_v38 = vpop.eup %708 }
 0x2a4   : > { %v440_v39 = vmul.f32 0.6931472, %v709_v38 }
 0x2a6   : > { %v441_v40 = vsub.f32 %v434_v30, %v440_v39 }
 0x2a8   : > { %443 = vst.msk [vmem:[%s315_s29] sm:$0xff] %vm442_vm1, %v441_v40  ;;  %v451_v41 = vsel %vm450_vm2, %v441_v40, 0.0 }
 0x2a9   : > { %v452_v42 = vrot.slane %v451_v41, 4 }
 0x2ab   : > { %v453_v43 = vadd.f32 %v452_v42, %v451_v41 }
 0x2ad   : > { %v454_v44 = vrot.slane %v453_v43, 2 }
 0x2af   : > { %v455_v45 = vadd.f32 %v454_v44, %v453_v43 }
 0x2b1   : > { %v456_v46 = vrot.slane %v455_v45, 1 }
 0x2b3   : > { %v457_v47 = vadd.f32 %v456_v46, %v455_v45 }
 0x2b5   : > { %458 = vst [vmem:[%s303_s13] sm:$0x1] %v457_v47 }
 0x2b6   : > { %749 = shalt.err (!%p746_p0)
}
 0x2b7   : > { %s750_s21 = scalar_lea.hbm %s477_s22, 16  ;;  %s754_s8 = scalar_lea.hbm %s981_s7, 32 }
 0x2b8   : > { %p751_p1 = scmp.ne.s32.totalorder %s477_s22, %s750_s21  ;;  %p755_p4 = scmp.lt.s32.totalorder %s477_s22, %s981_s7 }
 0x2b9   : > { %p756_p7 = scmp.lt.s32.totalorder %s754_s8, %s750_s21 }
 0x2ba   : > { %p752_p2 = pnand %p751_p1, %p887_p5 }
 0x2bb   : > { %p757_p8 = por %p756_p7, %p755_p4 }
 0x2bc   : > { %p753_p3 = pneg %p752_p2 }
 0x2be   : > { %p758_p6 = pnand %p757_p8, %p753_p3 }
 0x2c0   : > { %761 = shalt.err (!%p758_p6)
}
 0x2c1   : > { %653 = dma.vmem_to_hbm [thread:$0]  (%p887_p5), %s480_s14, 16, %s477_s22, %s464_s17  }
 0x2c2 PF: > { %p665_p9 = scmp.ge.s32.totalorder %s800_s27, 2  ;;  %s498_s15 = sand.u32 1, %s788_s24  }
 0x2c3   : > { %p985_p10 = scmp.ne.s32.totalorder %s983_s12, 0  ;;  %s499_s16 = scalar_lea.sflag [#allocation4], %s498_s15 }
 0x2c5   : > { %p660_p11 = pnand %p665_p9, %p985_p10 }
 0x2c7   : > { %p661_p12 = pneg %p660_p11 }
 0x2c9   : > { %783 = dma.done.wait (%p661_p12), %s499_s16, 16  }
 0x2ca   : > { %785 = vsyncadd (%p661_p12), %s499_s16, 4294967280  ;;  %p19_p13 = scmp.ge.s32.totalorder %s874_s30, 4   ;;  %s986_s24 = smov %s792_s25 }
 0x2cb   : > { %s987_s25 = smov %s796_s26  ;;  %s988_s26 = smov %s885_s10 }
 0x2cc   : > { %s989_s27 = smov %s874_s30  ;;  %21 = sbr.rel (!%p19_p13) target bundleno = 4 (0x4), region = 99 }
 0x2d1   :  { %503 = vsyncpa [#allocation3], 1 }
 0x2d2   :  { %505 = vsyncpa [#allocation3 + $0x1], 1 }
 0x2d3   :  { %506 = vsyncpa [#allocation4], 1 }
 0x2d4   :  { %508 = vsyncpa [#allocation4 + $0x1], 1 }

</bundles_post_ra>
